<compile_context>
chip_gen: v6e
topology: v6e:2x2x1
jax: 0.10.0
libtpu: 0.0.40
codegen_flags: <defaults>
</compile_context>

<pallas_src>
import jax
import jax.numpy as jnp
from jax import lax
from jax.experimental import pallas as pl
from jax.experimental.pallas import tpu as pltpu


_GRAY_W = (0.2989, 0.587, 0.114)  # torchvision rgb_to_grayscale weights


def _make_kernel(inv_npix):
    """inv_npix: 1 / (true H*W), baked as a compile-time constant (excludes padding)."""

    def kernel(ints_ref, params_ref, x_ref, o_ref):
        # ints_ref   : SMEM i32[6] = [op0, op1, op2, op3, apply_jitter, apply_gray]
        # params_ref : SMEM f32[4] = [brightness, contrast, saturation, hue]
        # x_ref/o_ref: VMEM (Bt, 3, R, 128) blocks (lane-dense flattened spatial dim)
        bf = params_ref[0]
        cf = params_ref[1]
        sf = params_ref[2]
        hf = params_ref[3]
        apply_jitter = ints_ref[4]
        apply_gray = ints_ref[5]

        img = x_ref[...].astype(jnp.float32)          # (Bt, 3, R, L)
        planes = (img[:, 0], img[:, 1], img[:, 2])     # three (Bt, R, L) planes

        def gray_of(p):
            r, g, b = p
            return _GRAY_W[0] * r + _GRAY_W[1] * g + _GRAY_W[2] * b

        def brightness(p):  # blend with zero
            return tuple(jnp.clip(bf * c, 0.0, 1.0) for c in p)

        def contrast(p):
            # per-image mean of the grayscale image; padded pixels are still zero
            # whenever contrast runs, so sum * (1/true_npix) is exact.
            r, g, b = p
            mean = (_GRAY_W[0] * jnp.sum(r, axis=(1, 2), keepdims=True)
                    + _GRAY_W[1] * jnp.sum(g, axis=(1, 2), keepdims=True)
                    + _GRAY_W[2] * jnp.sum(b, axis=(1, 2), keepdims=True)) * inv_npix
            return tuple(jnp.clip(cf * c + (1.0 - cf) * mean, 0.0, 1.0) for c in p)

        def saturation(p):  # blend with grayscale image
            gray = gray_of(p)
            return tuple(jnp.clip(sf * c + (1.0 - sf) * gray, 0.0, 1.0) for c in p)

        def hue(p):  # RGB -> HSV -> shift hue -> RGB (arithmetic form, no mods)
            r, g, b = p
            maxc = jnp.maximum(jnp.maximum(r, g), b)
            minc = jnp.minimum(jnp.minimum(r, g), b)
            eqc = maxc == minc
            cr = maxc - minc
            ones = jnp.ones_like(maxc)
            s_ = cr * pl.reciprocal(jnp.where(eqc, ones, maxc), approx=True)
            inv_cr = pl.reciprocal(jnp.where(eqc, ones, cr), approx=True)
            rc = (maxc - r) * inv_cr
            gc = (maxc - g) * inv_cr
            bc = (maxc - b) * inv_cr
            hr = jnp.where(maxc == r, bc - gc, 0.0)
            hg = jnp.where((maxc == g) & (maxc != r), 2.0 + rc - bc, 0.0)
            hb = jnp.where((maxc != g) & (maxc != r), 4.0 + gc - rc, 0.0)
            # fused hue-angle wrap: value is in [1-1/6-0.5, 1+5/6+0.5) -> two
            # conditional subtracts replace both jnp.mod calls.
            h = (hr + hg + hb) * (1.0 / 6.0) + (hf + 1.0)
            h = jnp.where(h >= 1.0, h - 1.0, h)
            h = jnp.where(h >= 1.0, h - 1.0, h)
            h6 = h * 6.0
            v = maxc

            def chan(n):
                k = n + h6                                   # in [n, n+6) < 11
                k = jnp.where(k >= 6.0, k - 6.0, k)
                t = jnp.clip(jnp.minimum(k, 4.0 - k), 0.0, 1.0)
                # clip guards the ~1e-3 error from the approx reciprocal
                return jnp.clip(v - v * s_ * t, 0.0, 1.0)

            return (chan(5.0), chan(3.0), chan(1.0))

        def jitter_body(i, p):
            # op order lives in SMEM; each op body is instantiated exactly once.
            op = ints_ref[i]
            return lax.cond(
                op == 0, brightness,
                lambda q: lax.cond(
                    op == 1, contrast,
                    lambda u: lax.cond(op == 2, saturation, hue, u),
                    q),
                p)

        planes = lax.cond(
            apply_jitter > 0,
            lambda p: lax.fori_loop(0, 4, jitter_body, p),
            lambda p: p,
            planes)

        def do_gray(p):
            g = gray_of(p)
            return (g, g, g)

        # RandomGrayscale: only the ~20% of calls with the flag set pay for it.
        planes = lax.cond(apply_gray > 0, do_gray, lambda p: p, planes)

        o_ref[...] = jnp.stack(planes, axis=1).astype(o_ref.dtype)

    return kernel


def color_distortion(x, key, s=1.0):
    """Pallas equivalent of ColorDistortion(s).forward(x); x: (B, 3, H, W) f32 in [0,1]."""
    B, C, H, W = x.shape
    assert C == 3, "ColorJitter operates on RGB images"

    # Sample params once per call (like torchvision on a batched tensor); jit-safe.
    kb, kc, ks, kh, ko, ka, kg = jax.random.split(key, 7)
    lo, hi = max(0.0, 1.0 - 0.8 * s), 1.0 + 0.8 * s
    bf = jax.random.uniform(kb, (), jnp.float32, lo, hi)
    cf = jax.random.uniform(kc, (), jnp.float32, lo, hi)
    sf = jax.random.uniform(ks, (), jnp.float32, lo, hi)
    hf = jax.random.uniform(kh, (), jnp.float32, -0.2 * s, 0.2 * s)
    order = jax.random.permutation(ko, 4).astype(jnp.int32)
    apply_jitter = (jax.random.uniform(ka, ()) < 0.8).astype(jnp.int32)  # RandomApply p=0.8
    apply_gray = (jax.random.uniform(kg, ()) < 0.2).astype(jnp.int32)    # RandomGrayscale p=0.2
    ints = jnp.concatenate([order, jnp.stack([apply_jitter, apply_gray])]).astype(jnp.int32)
    params = jnp.stack([bf, cf, sf, hf]).astype(jnp.float32)

    # Lane-dense layout: flatten H*W and pad up to a multiple of 128 so every
    # store is a full-width unmasked vst (padding is zero and stays zero through
    # any op that can precede contrast, so the per-image mean stays exact).
    L = 128
    HW = H * W
    HWp = ((HW + L - 1) // L) * L
    R = HWp // L
    x_flat = x.reshape(B, C, HW)
    if HWp != HW:
        x_flat = jnp.pad(x_flat, ((0, 0), (0, 0), (0, HWp - HW)))
    xr = x_flat.reshape(B, C, R, L)

    # Batch images per grid step to amortize per-step overhead (~0.35 us),
    # targeting ~2 MiB blocks, but keep >= 2 parallel steps when B >= 2 so both
    # v7x TensorCores are used.
    per_img_bytes = C * R * L * 4
    target_bytes = 2 << 20
    max_bt = max(1, target_bytes // per_img_bytes)
    divs = [d for d in range(1, B + 1) if B % d == 0 and d <= max_bt]
    if B >= 2:
        two_step = [d for d in divs if B // d >= 2]
        if two_step:
            divs = two_step
    Bt = max(divs) if divs else 1

    # Generation-aware VMEM budget: ~96 MiB cap on 128 MiB parts (v5e/v6e),
    # ~44 MiB cap on 64 MiB parts (v7x); headroom scales with live-plane count.
    plane_bytes = Bt * R * L * 4
    block_bytes = C * plane_bytes
    try:
        phys_vmem = int(pltpu.get_tpu_info().vmem_capacity_bytes)
    except Exception:
        phys_vmem = 64 << 20
    cap = (96 << 20) if phys_vmem >= (128 << 20) else (44 << 20)
    vmem_limit = int(min(max(4 * block_bytes + 14 * plane_bytes + (8 << 20), 32 << 20), cap))

    # TODO(synk): for multi-megapixel images on v7x, add a spatial tile axis to the
    # grid (with a streamed per-image gray-sum pass for the contrast mean) instead
    # of holding the whole image in one block.

    kernel = _make_kernel(1.0 / float(HW))

    yr = pl.pallas_call(
        kernel,
        out_shape=jax.ShapeDtypeStruct((B, C, R, L), x.dtype),
        grid=(B // Bt,),
        in_specs=[
            pl.BlockSpec(memory_space=pltpu.MemorySpace.SMEM),   # ints   i32[6]
            pl.BlockSpec(memory_space=pltpu.MemorySpace.SMEM),   # params f32[4]
            pl.BlockSpec((Bt, C, R, L), lambda i: (i, 0, 0, 0)),  # images
        ],
        out_specs=pl.BlockSpec((Bt, C, R, L), lambda i: (i, 0, 0, 0)),
        compiler_params=pltpu.CompilerParams(
            dimension_semantics=("parallel",),
            vmem_limit_bytes=vmem_limit),
    )(ints, params, xr)

    return yr.reshape(B, C, HWp)[:, :, :HW].reshape(B, C, H, W)


if __name__ == "__main__":
    key = jax.random.PRNGKey(0)
    kx, kr = jax.random.split(key)
    x = jax.random.uniform(kx, (2, 3, 16, 16), dtype=jnp.float32)  # RGB in [0,1]

    fn = jax.jit(color_distortion, static_argnames="s")
    y = fn(x, kr, s=1.0)
    jax.block_until_ready(y)

    assert y.shape == x.shape and y.dtype == x.dtype
    assert bool(jnp.all(jnp.isfinite(y)))
    assert bool(jnp.all((y >= 0.0) & (y <= 1.0)))
    print("KERNEL_OK")
</pallas_src>

<mosaic_0001>
module attributes {stable_mosaic.version = 11 : i64} {
  func.func @kernel(%arg0: i32, %arg1: memref<6xi32, #tpu.memory_space<smem>>, %arg2: memref<4xf32, #tpu.memory_space<smem>>, %arg3: memref<1x3x2x128xf32, #tpu.memory_space<vmem>>, %arg4: memref<1x3x2x128xf32, #tpu.memory_space<vmem>>) attributes {dimension_semantics = [#tpu.dimension_semantics<parallel>], iteration_bounds = array<i64: 2>, scalar_prefetch = 0 : i64, scratch_operands = 0 : i64, tpu.core_type = #tpu.core_type<tc>, window_params = [{transform_indices = @transform_0, window_bounds = array<i64: 6>}, {transform_indices = @transform_1, window_bounds = array<i64: 4>}, {transform_indices = @transform_2, window_bounds = array<i64: 1, 3, 2, 128>}, {transform_indices = @transform_3, window_bounds = array<i64: 1, 3, 2, 128>}]} {
    %c0 = arith.constant 0 : index
    %0 = memref.load %arg2[%c0] : memref<4xf32, #tpu.memory_space<smem>>
    %c1 = arith.constant 1 : index
    %1 = memref.load %arg2[%c1] : memref<4xf32, #tpu.memory_space<smem>>
    %c2 = arith.constant 2 : index
    %2 = memref.load %arg2[%c2] : memref<4xf32, #tpu.memory_space<smem>>
    %c3 = arith.constant 3 : index
    %3 = memref.load %arg2[%c3] : memref<4xf32, #tpu.memory_space<smem>>
    %c4 = arith.constant 4 : index
    %4 = memref.load %arg1[%c4] : memref<6xi32, #tpu.memory_space<smem>>
    %c5 = arith.constant 5 : index
    %5 = memref.load %arg1[%c5] : memref<6xi32, #tpu.memory_space<smem>>
    %c0_0 = arith.constant 0 : index
    %c0_1 = arith.constant 0 : index
    %c0_2 = arith.constant 0 : index
    %c0_3 = arith.constant 0 : index
    %6 = vector.load %arg3[%c0_0, %c0_1, %c0_2, %c0_3] : memref<1x3x2x128xf32, #tpu.memory_space<vmem>>, vector<1x3x2x128xf32>
    %7 = vector.extract_strided_slice %6 {offsets = [0, 0, 0, 0], sizes = [1, 1, 2, 128], strides = [1, 1, 1, 1]} : vector<1x3x2x128xf32> to vector<1x1x2x128xf32>
    %8 = vector.shape_cast %7 : vector<1x1x2x128xf32> to vector<1x2x128xf32>
    %9 = vector.extract_strided_slice %6 {offsets = [0, 1, 0, 0], sizes = [1, 1, 2, 128], strides = [1, 1, 1, 1]} : vector<1x3x2x128xf32> to vector<1x1x2x128xf32>
    %10 = vector.shape_cast %9 : vector<1x1x2x128xf32> to vector<1x2x128xf32>
    %11 = vector.extract_strided_slice %6 {offsets = [0, 2, 0, 0], sizes = [1, 1, 2, 128], strides = [1, 1, 1, 1]} : vector<1x3x2x128xf32> to vector<1x1x2x128xf32>
    %12 = vector.shape_cast %11 : vector<1x1x2x128xf32> to vector<1x2x128xf32>
    %c0_i32 = arith.constant 0 : i32
    %13 = arith.cmpi sgt, %4, %c0_i32 : i32
    %14 = arith.extui %13 : i1 to i32
    %c0_i32_4 = arith.constant 0 : i32
    %15 = arith.cmpi ne, %14, %c0_i32_4 : i32
    %16:3 = scf.if %15 -> (vector<1x2x128xf32>, vector<1x2x128xf32>, vector<1x2x128xf32>) {
      %c0_i32_11 = arith.constant 0 : i32
      %c4_i32 = arith.constant 4 : i32
      %26 = arith.addi %c0_i32_11, %c4_i32 : i32
      %c1_i32 = arith.constant 1 : i32
      %27:3 = scf.for %arg5 = %c0_i32_11 to %26 step %c1_i32 iter_args(%arg6 = %8, %arg7 = %10, %arg8 = %12) -> (vector<1x2x128xf32>, vector<1x2x128xf32>, vector<1x2x128xf32>)  : i32 {
        %28 = arith.index_cast %arg5 : i32 to index
        %29 = memref.load %arg1[%28] : memref<6xi32, #tpu.memory_space<smem>>
        %c0_i32_13 = arith.constant 0 : i32
        %30 = arith.cmpi eq, %29, %c0_i32_13 : i32
        %31 = arith.extui %30 : i1 to i32
        %c0_i32_14 = arith.constant 0 : i32
        %32 = arith.cmpi ne, %31, %c0_i32_14 : i32
        %33:3 = scf.if %32 -> (vector<1x2x128xf32>, vector<1x2x128xf32>, vector<1x2x128xf32>) {
          %34 = vector.broadcast %0 : f32 to vector<1x2x128xf32>
          %35 = arith.mulf %34, %arg6 : vector<1x2x128xf32>
          %cst = arith.constant 0.000000e+00 : f32
          %cst_15 = arith.constant 1.000000e+00 : f32
          %36 = vector.broadcast %cst : f32 to vector<1x2x128xf32>
          %37 = arith.maximumf %36, %35 : vector<1x2x128xf32>
          %38 = vector.broadcast %cst_15 : f32 to vector<1x2x128xf32>
          %39 = arith.minimumf %38, %37 : vector<1x2x128xf32>
          %40 = vector.broadcast %0 : f32 to vector<1x2x128xf32>
          %41 = arith.mulf %40, %arg7 : vector<1x2x128xf32>
          %cst_16 = arith.constant 0.000000e+00 : f32
          %cst_17 = arith.constant 1.000000e+00 : f32
          %42 = vector.broadcast %cst_16 : f32 to vector<1x2x128xf32>
          %43 = arith.maximumf %42, %41 : vector<1x2x128xf32>
          %44 = vector.broadcast %cst_17 : f32 to vector<1x2x128xf32>
          %45 = arith.minimumf %44, %43 : vector<1x2x128xf32>
          %46 = vector.broadcast %0 : f32 to vector<1x2x128xf32>
          %47 = arith.mulf %46, %arg8 : vector<1x2x128xf32>
          %cst_18 = arith.constant 0.000000e+00 : f32
          %cst_19 = arith.constant 1.000000e+00 : f32
          %48 = vector.broadcast %cst_18 : f32 to vector<1x2x128xf32>
          %49 = arith.maximumf %48, %47 : vector<1x2x128xf32>
          %50 = vector.broadcast %cst_19 : f32 to vector<1x2x128xf32>
          %51 = arith.minimumf %50, %49 : vector<1x2x128xf32>
          scf.yield %39, %45, %51 : vector<1x2x128xf32>, vector<1x2x128xf32>, vector<1x2x128xf32>
        } else {
          %c1_i32_15 = arith.constant 1 : i32
          %34 = arith.cmpi eq, %29, %c1_i32_15 : i32
          %35 = arith.extui %34 : i1 to i32
          %c0_i32_16 = arith.constant 0 : i32
          %36 = arith.cmpi ne, %35, %c0_i32_16 : i32
          %37:3 = scf.if %36 -> (vector<1x2x128xf32>, vector<1x2x128xf32>, vector<1x2x128xf32>) {
            %cst = arith.constant dense<0.000000e+00> : vector<1xf32>
            %38 = vector.multi_reduction <add>, %arg6, %cst [1, 2] : vector<1x2x128xf32> to vector<1xf32>
            %39 = vector.shape_cast %38 : vector<1xf32> to vector<1x1x1xf32>
            %cst_17 = arith.constant 2.989000e-01 : f32
            %40 = vector.broadcast %cst_17 : f32 to vector<1x1x1xf32>
            %41 = arith.mulf %40, %39 : vector<1x1x1xf32>
            %cst_18 = arith.constant dense<0.000000e+00> : vector<1xf32>
            %42 = vector.multi_reduction <add>, %arg7, %cst_18 [1, 2] : vector<1x2x128xf32> to vector<1xf32>
            %43 = vector.shape_cast %42 : vector<1xf32> to vector<1x1x1xf32>
            %cst_19 = arith.constant 5.870000e-01 : f32
            %44 = vector.broadcast %cst_19 : f32 to vector<1x1x1xf32>
            %45 = arith.mulf %44, %43 : vector<1x1x1xf32>
            %46 = arith.addf %41, %45 : vector<1x1x1xf32>
            %cst_20 = arith.constant dense<0.000000e+00> : vector<1xf32>
            %47 = vector.multi_reduction <add>, %arg8, %cst_20 [1, 2] : vector<1x2x128xf32> to vector<1xf32>
            %48 = vector.shape_cast %47 : vector<1xf32> to vector<1x1x1xf32>
            %cst_21 = arith.constant 1.140000e-01 : f32
            %49 = vector.broadcast %cst_21 : f32 to vector<1x1x1xf32>
            %50 = arith.mulf %49, %48 : vector<1x1x1xf32>
            %51 = arith.addf %46, %50 : vector<1x1x1xf32>
            %cst_22 = arith.constant 3.906250e-03 : f32
            %52 = vector.broadcast %cst_22 : f32 to vector<1x1x1xf32>
            %53 = arith.mulf %51, %52 : vector<1x1x1xf32>
            %54 = vector.broadcast %1 : f32 to vector<1x2x128xf32>
            %55 = arith.mulf %54, %arg6 : vector<1x2x128xf32>
            %cst_23 = arith.constant 1.000000e+00 : f32
            %56 = arith.subf %cst_23, %1 : f32
            %57 = vector.broadcast %56 : f32 to vector<1x1x1xf32>
            %58 = arith.mulf %57, %53 : vector<1x1x1xf32>
            %59 = vector.broadcast %58 : vector<1x1x1xf32> to vector<1x2x128xf32>
            %60 = arith.addf %55, %59 : vector<1x2x128xf32>
            %cst_24 = arith.constant 0.000000e+00 : f32
            %cst_25 = arith.constant 1.000000e+00 : f32
            %61 = vector.broadcast %cst_24 : f32 to vector<1x2x128xf32>
            %62 = arith.maximumf %61, %60 : vector<1x2x128xf32>
            %63 = vector.broadcast %cst_25 : f32 to vector<1x2x128xf32>
            %64 = arith.minimumf %63, %62 : vector<1x2x128xf32>
            %65 = vector.broadcast %1 : f32 to vector<1x2x128xf32>
            %66 = arith.mulf %65, %arg7 : vector<1x2x128xf32>
            %cst_26 = arith.constant 1.000000e+00 : f32
            %67 = arith.subf %cst_26, %1 : f32
            %68 = vector.broadcast %67 : f32 to vector<1x1x1xf32>
            %69 = arith.mulf %68, %53 : vector<1x1x1xf32>
            %70 = vector.broadcast %69 : vector<1x1x1xf32> to vector<1x2x128xf32>
            %71 = arith.addf %66, %70 : vector<1x2x128xf32>
            %cst_27 = arith.constant 0.000000e+00 : f32
            %cst_28 = arith.constant 1.000000e+00 : f32
            %72 = vector.broadcast %cst_27 : f32 to vector<1x2x128xf32>
            %73 = arith.maximumf %72, %71 : vector<1x2x128xf32>
            %74 = vector.broadcast %cst_28 : f32 to vector<1x2x128xf32>
            %75 = arith.minimumf %74, %73 : vector<1x2x128xf32>
            %76 = vector.broadcast %1 : f32 to vector<1x2x128xf32>
            %77 = arith.mulf %76, %arg8 : vector<1x2x128xf32>
            %cst_29 = arith.constant 1.000000e+00 : f32
            %78 = arith.subf %cst_29, %1 : f32
            %79 = vector.broadcast %78 : f32 to vector<1x1x1xf32>
            %80 = arith.mulf %79, %53 : vector<1x1x1xf32>
            %81 = vector.broadcast %80 : vector<1x1x1xf32> to vector<1x2x128xf32>
            %82 = arith.addf %77, %81 : vector<1x2x128xf32>
            %cst_30 = arith.constant 0.000000e+00 : f32
            %cst_31 = arith.constant 1.000000e+00 : f32
            %83 = vector.broadcast %cst_30 : f32 to vector<1x2x128xf32>
            %84 = arith.maximumf %83, %82 : vector<1x2x128xf32>
            %85 = vector.broadcast %cst_31 : f32 to vector<1x2x128xf32>
            %86 = arith.minimumf %85, %84 : vector<1x2x128xf32>
            scf.yield %64, %75, %86 : vector<1x2x128xf32>, vector<1x2x128xf32>, vector<1x2x128xf32>
          } else {
            %c2_i32 = arith.constant 2 : i32
            %38 = arith.cmpi eq, %29, %c2_i32 : i32
            %39 = arith.extui %38 : i1 to i32
            %c0_i32_17 = arith.constant 0 : i32
            %40 = arith.cmpi ne, %39, %c0_i32_17 : i32
            %41:3 = scf.if %40 -> (vector<1x2x128xf32>, vector<1x2x128xf32>, vector<1x2x128xf32>) {
              %cst = arith.constant 2.989000e-01 : f32
              %42 = vector.broadcast %cst : f32 to vector<1x2x128xf32>
              %43 = arith.mulf %42, %arg6 : vector<1x2x128xf32>
              %cst_18 = arith.constant 5.870000e-01 : f32
              %44 = vector.broadcast %cst_18 : f32 to vector<1x2x128xf32>
              %45 = arith.mulf %44, %arg7 : vector<1x2x128xf32>
              %46 = arith.addf %43, %45 : vector<1x2x128xf32>
              %cst_19 = arith.constant 1.140000e-01 : f32
              %47 = vector.broadcast %cst_19 : f32 to vector<1x2x128xf32>
              %48 = arith.mulf %47, %arg8 : vector<1x2x128xf32>
              %49 = arith.addf %46, %48 : vector<1x2x128xf32>
              %50 = vector.broadcast %2 : f32 to vector<1x2x128xf32>
              %51 = arith.mulf %50, %arg6 : vector<1x2x128xf32>
              %cst_20 = arith.constant 1.000000e+00 : f32
              %52 = arith.subf %cst_20, %2 : f32
              %53 = vector.broadcast %52 : f32 to vector<1x2x128xf32>
              %54 = arith.mulf %53, %49 : vector<1x2x128xf32>
              %55 = arith.addf %51, %54 : vector<1x2x128xf32>
              %cst_21 = arith.constant 0.000000e+00 : f32
              %cst_22 = arith.constant 1.000000e+00 : f32
              %56 = vector.broadcast %cst_21 : f32 to vector<1x2x128xf32>
              %57 = arith.maximumf %56, %55 : vector<1x2x128xf32>
              %58 = vector.broadcast %cst_22 : f32 to vector<1x2x128xf32>
              %59 = arith.minimumf %58, %57 : vector<1x2x128xf32>
              %60 = vector.broadcast %2 : f32 to vector<1x2x128xf32>
              %61 = arith.mulf %60, %arg7 : vector<1x2x128xf32>
              %cst_23 = arith.constant 1.000000e+00 : f32
              %62 = arith.subf %cst_23, %2 : f32
              %63 = vector.broadcast %62 : f32 to vector<1x2x128xf32>
              %64 = arith.mulf %63, %49 : vector<1x2x128xf32>
              %65 = arith.addf %61, %64 : vector<1x2x128xf32>
              %cst_24 = arith.constant 0.000000e+00 : f32
              %cst_25 = arith.constant 1.000000e+00 : f32
              %66 = vector.broadcast %cst_24 : f32 to vector<1x2x128xf32>
              %67 = arith.maximumf %66, %65 : vector<1x2x128xf32>
              %68 = vector.broadcast %cst_25 : f32 to vector<1x2x128xf32>
              %69 = arith.minimumf %68, %67 : vector<1x2x128xf32>
              %70 = vector.broadcast %2 : f32 to vector<1x2x128xf32>
              %71 = arith.mulf %70, %arg8 : vector<1x2x128xf32>
              %cst_26 = arith.constant 1.000000e+00 : f32
              %72 = arith.subf %cst_26, %2 : f32
              %73 = vector.broadcast %72 : f32 to vector<1x2x128xf32>
              %74 = arith.mulf %73, %49 : vector<1x2x128xf32>
              %75 = arith.addf %71, %74 : vector<1x2x128xf32>
              %cst_27 = arith.constant 0.000000e+00 : f32
              %cst_28 = arith.constant 1.000000e+00 : f32
              %76 = vector.broadcast %cst_27 : f32 to vector<1x2x128xf32>
              %77 = arith.maximumf %76, %75 : vector<1x2x128xf32>
              %78 = vector.broadcast %cst_28 : f32 to vector<1x2x128xf32>
              %79 = arith.minimumf %78, %77 : vector<1x2x128xf32>
              scf.yield %59, %69, %79 : vector<1x2x128xf32>, vector<1x2x128xf32>, vector<1x2x128xf32>
            } else {
              %42 = arith.maximumf %arg6, %arg7 : vector<1x2x128xf32>
              %43 = arith.maximumf %42, %arg8 : vector<1x2x128xf32>
              %44 = arith.minimumf %arg6, %arg7 : vector<1x2x128xf32>
              %45 = arith.minimumf %44, %arg8 : vector<1x2x128xf32>
              %46 = arith.cmpf oeq, %43, %45 : vector<1x2x128xf32>
              %47 = arith.subf %43, %45 : vector<1x2x128xf32>
              %cst = arith.constant 1.000000e+00 : f32
              %48 = vector.broadcast %cst : f32 to vector<1x2x128xf32>
              %49 = arith.select %46, %48, %43 : vector<1x2x128xi1>, vector<1x2x128xf32>
              %50 = tpu.reciprocal %49 {approx = true} : vector<1x2x128xf32> -> vector<1x2x128xf32>
              %51 = arith.mulf %47, %50 : vector<1x2x128xf32>
              %52 = arith.select %46, %48, %47 : vector<1x2x128xi1>, vector<1x2x128xf32>
              %53 = tpu.reciprocal %52 {approx = true} : vector<1x2x128xf32> -> vector<1x2x128xf32>
              %54 = arith.subf %43, %arg6 : vector<1x2x128xf32>
              %55 = arith.mulf %54, %53 : vector<1x2x128xf32>
              %56 = arith.subf %43, %arg7 : vector<1x2x128xf32>
              %57 = arith.mulf %56, %53 : vector<1x2x128xf32>
              %58 = arith.subf %43, %arg8 : vector<1x2x128xf32>
              %59 = arith.mulf %58, %53 : vector<1x2x128xf32>
              %60 = arith.cmpf oeq, %43, %arg6 : vector<1x2x128xf32>
              %61 = arith.subf %59, %57 : vector<1x2x128xf32>
              %cst_18 = arith.constant 0.000000e+00 : f32
              %62 = vector.broadcast %cst_18 : f32 to vector<1x2x128xf32>
              %63 = arith.select %60, %61, %62 : vector<1x2x128xi1>, vector<1x2x128xf32>
              %64 = arith.cmpf oeq, %43, %arg7 : vector<1x2x128xf32>
              %65 = arith.cmpf one, %43, %arg6 : vector<1x2x128xf32>
              %66 = arith.andi %64, %65 : vector<1x2x128xi1>
              %cst_19 = arith.constant 2.000000e+00 : f32
              %67 = vector.broadcast %cst_19 : f32 to vector<1x2x128xf32>
              %68 = arith.addf %67, %55 : vector<1x2x128xf32>
              %69 = arith.subf %68, %59 : vector<1x2x128xf32>
              %cst_20 = arith.constant 0.000000e+00 : f32
              %70 = vector.broadcast %cst_20 : f32 to vector<1x2x128xf32>
              %71 = arith.select %66, %69, %70 : vector<1x2x128xi1>, vector<1x2x128xf32>
              %72 = arith.cmpf one, %43, %arg7 : vector<1x2x128xf32>
              %73 = arith.cmpf one, %43, %arg6 : vector<1x2x128xf32>
              %74 = arith.andi %72, %73 : vector<1x2x128xi1>
              %cst_21 = arith.constant 4.000000e+00 : f32
              %75 = vector.broadcast %cst_21 : f32 to vector<1x2x128xf32>
              %76 = arith.addf %75, %57 : vector<1x2x128xf32>
              %77 = arith.subf %76, %55 : vector<1x2x128xf32>
              %cst_22 = arith.constant 0.000000e+00 : f32
              %78 = vector.broadcast %cst_22 : f32 to vector<1x2x128xf32>
              %79 = arith.select %74, %77, %78 : vector<1x2x128xi1>, vector<1x2x128xf32>
              %80 = arith.addf %63, %71 : vector<1x2x128xf32>
              %81 = arith.addf %80, %79 : vector<1x2x128xf32>
              %cst_23 = arith.constant 0.166666672 : f32
              %82 = vector.broadcast %cst_23 : f32 to vector<1x2x128xf32>
              %83 = arith.mulf %81, %82 : vector<1x2x128xf32>
              %cst_24 = arith.constant 1.000000e+00 : f32
              %84 = arith.addf %3, %cst_24 : f32
              %85 = vector.broadcast %84 : f32 to vector<1x2x128xf32>
              %86 = arith.addf %83, %85 : vector<1x2x128xf32>
              %cst_25 = arith.constant 1.000000e+00 : f32
              %87 = vector.broadcast %cst_25 : f32 to vector<1x2x128xf32>
              %88 = arith.cmpf oge, %86, %87 : vector<1x2x128xf32>
              %cst_26 = arith.constant 1.000000e+00 : f32
              %89 = vector.broadcast %cst_26 : f32 to vector<1x2x128xf32>
              %90 = arith.subf %86, %89 : vector<1x2x128xf32>
              %91 = arith.select %88, %90, %86 : vector<1x2x128xi1>, vector<1x2x128xf32>
              %cst_27 = arith.constant 1.000000e+00 : f32
              %92 = vector.broadcast %cst_27 : f32 to vector<1x2x128xf32>
              %93 = arith.cmpf oge, %91, %92 : vector<1x2x128xf32>
              %cst_28 = arith.constant 1.000000e+00 : f32
              %94 = vector.broadcast %cst_28 : f32 to vector<1x2x128xf32>
              %95 = arith.subf %91, %94 : vector<1x2x128xf32>
              %96 = arith.select %93, %95, %91 : vector<1x2x128xi1>, vector<1x2x128xf32>
              %cst_29 = arith.constant 6.000000e+00 : f32
              %97 = vector.broadcast %cst_29 : f32 to vector<1x2x128xf32>
              %98 = arith.mulf %96, %97 : vector<1x2x128xf32>
              %cst_30 = arith.constant 5.000000e+00 : f32
              %99 = vector.broadcast %cst_30 : f32 to vector<1x2x128xf32>
              %100 = arith.addf %99, %98 : vector<1x2x128xf32>
              %cst_31 = arith.constant 6.000000e+00 : f32
              %101 = vector.broadcast %cst_31 : f32 to vector<1x2x128xf32>
              %102 = arith.cmpf oge, %100, %101 : vector<1x2x128xf32>
              %cst_32 = arith.constant 6.000000e+00 : f32
              %103 = vector.broadcast %cst_32 : f32 to vector<1x2x128xf32>
              %104 = arith.subf %100, %103 : vector<1x2x128xf32>
              %105 = arith.select %102, %104, %100 : vector<1x2x128xi1>, vector<1x2x128xf32>
              %cst_33 = arith.constant 4.000000e+00 : f32
              %106 = vector.broadcast %cst_33 : f32 to vector<1x2x128xf32>
              %107 = arith.subf %106, %105 : vector<1x2x128xf32>
              %108 = arith.minimumf %105, %107 : vector<1x2x128xf32>
              %cst_34 = arith.constant 0.000000e+00 : f32
              %cst_35 = arith.constant 1.000000e+00 : f32
              %109 = vector.broadcast %cst_34 : f32 to vector<1x2x128xf32>
              %110 = arith.maximumf %109, %108 : vector<1x2x128xf32>
              %111 = vector.broadcast %cst_35 : f32 to vector<1x2x128xf32>
              %112 = arith.minimumf %111, %110 : vector<1x2x128xf32>
              %113 = arith.mulf %43, %51 : vector<1x2x128xf32>
              %114 = arith.mulf %113, %112 : vector<1x2x128xf32>
              %115 = arith.subf %43, %114 : vector<1x2x128xf32>
              %cst_36 = arith.constant 0.000000e+00 : f32
              %cst_37 = arith.constant 1.000000e+00 : f32
              %116 = vector.broadcast %cst_36 : f32 to vector<1x2x128xf32>
              %117 = arith.maximumf %116, %115 : vector<1x2x128xf32>
              %118 = vector.broadcast %cst_37 : f32 to vector<1x2x128xf32>
              %119 = arith.minimumf %118, %117 : vector<1x2x128xf32>
              %cst_38 = arith.constant 3.000000e+00 : f32
              %120 = vector.broadcast %cst_38 : f32 to vector<1x2x128xf32>
              %121 = arith.addf %120, %98 : vector<1x2x128xf32>
              %cst_39 = arith.constant 6.000000e+00 : f32
              %122 = vector.broadcast %cst_39 : f32 to vector<1x2x128xf32>
              %123 = arith.cmpf oge, %121, %122 : vector<1x2x128xf32>
              %cst_40 = arith.constant 6.000000e+00 : f32
              %124 = vector.broadcast %cst_40 : f32 to vector<1x2x128xf32>
              %125 = arith.subf %121, %124 : vector<1x2x128xf32>
              %126 = arith.select %123, %125, %121 : vector<1x2x128xi1>, vector<1x2x128xf32>
              %cst_41 = arith.constant 4.000000e+00 : f32
              %127 = vector.broadcast %cst_41 : f32 to vector<1x2x128xf32>
              %128 = arith.subf %127, %126 : vector<1x2x128xf32>
              %129 = arith.minimumf %126, %128 : vector<1x2x128xf32>
              %cst_42 = arith.constant 0.000000e+00 : f32
              %cst_43 = arith.constant 1.000000e+00 : f32
              %130 = vector.broadcast %cst_42 : f32 to vector<1x2x128xf32>
              %131 = arith.maximumf %130, %129 : vector<1x2x128xf32>
              %132 = vector.broadcast %cst_43 : f32 to vector<1x2x128xf32>
              %133 = arith.minimumf %132, %131 : vector<1x2x128xf32>
              %134 = arith.mulf %43, %51 : vector<1x2x128xf32>
              %135 = arith.mulf %134, %133 : vector<1x2x128xf32>
              %136 = arith.subf %43, %135 : vector<1x2x128xf32>
              %cst_44 = arith.constant 0.000000e+00 : f32
              %cst_45 = arith.constant 1.000000e+00 : f32
              %137 = vector.broadcast %cst_44 : f32 to vector<1x2x128xf32>
              %138 = arith.maximumf %137, %136 : vector<1x2x128xf32>
              %139 = vector.broadcast %cst_45 : f32 to vector<1x2x128xf32>
              %140 = arith.minimumf %139, %138 : vector<1x2x128xf32>
              %cst_46 = arith.constant 1.000000e+00 : f32
              %141 = vector.broadcast %cst_46 : f32 to vector<1x2x128xf32>
              %142 = arith.addf %141, %98 : vector<1x2x128xf32>
              %cst_47 = arith.constant 6.000000e+00 : f32
              %143 = vector.broadcast %cst_47 : f32 to vector<1x2x128xf32>
              %144 = arith.cmpf oge, %142, %143 : vector<1x2x128xf32>
              %cst_48 = arith.constant 6.000000e+00 : f32
              %145 = vector.broadcast %cst_48 : f32 to vector<1x2x128xf32>
              %146 = arith.subf %142, %145 : vector<1x2x128xf32>
              %147 = arith.select %144, %146, %142 : vector<1x2x128xi1>, vector<1x2x128xf32>
              %cst_49 = arith.constant 4.000000e+00 : f32
              %148 = vector.broadcast %cst_49 : f32 to vector<1x2x128xf32>
              %149 = arith.subf %148, %147 : vector<1x2x128xf32>
              %150 = arith.minimumf %147, %149 : vector<1x2x128xf32>
              %cst_50 = arith.constant 0.000000e+00 : f32
              %cst_51 = arith.constant 1.000000e+00 : f32
              %151 = vector.broadcast %cst_50 : f32 to vector<1x2x128xf32>
              %152 = arith.maximumf %151, %150 : vector<1x2x128xf32>
              %153 = vector.broadcast %cst_51 : f32 to vector<1x2x128xf32>
              %154 = arith.minimumf %153, %152 : vector<1x2x128xf32>
              %155 = arith.mulf %43, %51 : vector<1x2x128xf32>
              %156 = arith.mulf %155, %154 : vector<1x2x128xf32>
              %157 = arith.subf %43, %156 : vector<1x2x128xf32>
              %cst_52 = arith.constant 0.000000e+00 : f32
              %cst_53 = arith.constant 1.000000e+00 : f32
              %158 = vector.broadcast %cst_52 : f32 to vector<1x2x128xf32>
              %159 = arith.maximumf %158, %157 : vector<1x2x128xf32>
              %160 = vector.broadcast %cst_53 : f32 to vector<1x2x128xf32>
              %161 = arith.minimumf %160, %159 : vector<1x2x128xf32>
              scf.yield %119, %140, %161 : vector<1x2x128xf32>, vector<1x2x128xf32>, vector<1x2x128xf32>
            }
            scf.yield %41#0, %41#1, %41#2 : vector<1x2x128xf32>, vector<1x2x128xf32>, vector<1x2x128xf32>
          }
          scf.yield %37#0, %37#1, %37#2 : vector<1x2x128xf32>, vector<1x2x128xf32>, vector<1x2x128xf32>
        }
        scf.yield %33#0, %33#1, %33#2 : vector<1x2x128xf32>, vector<1x2x128xf32>, vector<1x2x128xf32>
      }
      %c4_i32_12 = arith.constant 4 : i32
      scf.yield %27#0, %27#1, %27#2 : vector<1x2x128xf32>, vector<1x2x128xf32>, vector<1x2x128xf32>
    } else {
      scf.yield %8, %10, %12 : vector<1x2x128xf32>, vector<1x2x128xf32>, vector<1x2x128xf32>
    }
    %c0_i32_5 = arith.constant 0 : i32
    %17 = arith.cmpi sgt, %5, %c0_i32_5 : i32
    %18 = arith.extui %17 : i1 to i32
    %c0_i32_6 = arith.constant 0 : i32
    %19 = arith.cmpi ne, %18, %c0_i32_6 : i32
    %20:3 = scf.if %19 -> (vector<1x2x128xf32>, vector<1x2x128xf32>, vector<1x2x128xf32>) {
      %cst = arith.constant 2.989000e-01 : f32
      %26 = vector.broadcast %cst : f32 to vector<1x2x128xf32>
      %27 = arith.mulf %26, %16#0 : vector<1x2x128xf32>
      %cst_11 = arith.constant 5.870000e-01 : f32
      %28 = vector.broadcast %cst_11 : f32 to vector<1x2x128xf32>
      %29 = arith.mulf %28, %16#1 : vector<1x2x128xf32>
      %30 = arith.addf %27, %29 : vector<1x2x128xf32>
      %cst_12 = arith.constant 1.140000e-01 : f32
      %31 = vector.broadcast %cst_12 : f32 to vector<1x2x128xf32>
      %32 = arith.mulf %31, %16#2 : vector<1x2x128xf32>
      %33 = arith.addf %30, %32 : vector<1x2x128xf32>
      scf.yield %33, %33, %33 : vector<1x2x128xf32>, vector<1x2x128xf32>, vector<1x2x128xf32>
    } else {
      scf.yield %16#0, %16#1, %16#2 : vector<1x2x128xf32>, vector<1x2x128xf32>, vector<1x2x128xf32>
    }
    %21 = vector.shape_cast %20#0 : vector<1x2x128xf32> to vector<1x1x2x128xf32>
    %22 = vector.shape_cast %20#1 : vector<1x2x128xf32> to vector<1x1x2x128xf32>
    %23 = vector.shape_cast %20#2 : vector<1x2x128xf32> to vector<1x1x2x128xf32>
    %24 = tpu.concatenate %21, %22, %23 in 1 : vector<1x1x2x128xf32>, vector<1x1x2x128xf32>, vector<1x1x2x128xf32> -> vector<1x3x2x128xf32>
    %c0_7 = arith.constant 0 : index
    %c0_8 = arith.constant 0 : index
    %c0_9 = arith.constant 0 : index
    %c0_10 = arith.constant 0 : index
    %25 = vector.load %arg4[%c0_7, %c0_8, %c0_9, %c0_10] : memref<1x3x2x128xf32, #tpu.memory_space<vmem>>, vector<1x3x2x128xf32>
    tpu.vector_store %arg4[%c0_7, %c0_8, %c0_9, %c0_10], %24 {strides = array<i32>} : memref<1x3x2x128xf32, #tpu.memory_space<vmem>>, vector<1x3x2x128xf32>,
    return
  }
  func.func @transform_0(%arg0: i32) -> i32 {
    %c0_i32 = arith.constant 0 : i32
    %c0_i32_0 = arith.constant 0 : i32
    return %c0_i32 : i32
  }
  func.func @transform_1(%arg0: i32) -> i32 {
    %c0_i32 = arith.constant 0 : i32
    %c0_i32_0 = arith.constant 0 : i32
    return %c0_i32 : i32
  }
  func.func @transform_2(%arg0: i32) -> (i32, i32, i32, i32) {
    %c0_i32 = arith.constant 0 : i32
    %c0_i32_0 = arith.constant 0 : i32
    %c0_i32_1 = arith.constant 0 : i32
    %c0_i32_2 = arith.constant 0 : i32
    return %arg0, %c0_i32, %c0_i32_0, %c0_i32_1 : i32, i32, i32, i32
  }
  func.func @transform_3(%arg0: i32) -> (i32, i32, i32, i32) {
    %c0_i32 = arith.constant 0 : i32
    %c0_i32_0 = arith.constant 0 : i32
    %c0_i32_1 = arith.constant 0 : i32
    %c0_i32_2 = arith.constant 0 : i32
    return %arg0, %c0_i32, %c0_i32_0, %c0_i32_1 : i32, i32, i32, i32
  }
}

</mosaic_0001>

<bundles_post_ra>
// kernel: color_distortion.3
= control target key start
LH: loop header
LB: loop body
LE: loop exit
PB: predicated region body
PF: predicated region fallthrough
CT: control target
= control target key end

     0   :  { %8 = vsyncpa [#allocation3], 0  ;;  %s1253_s0 = inlined_call_operand.vmem [shape: s32[6], index: 0, kind: input, shape index: {}]   ;;  %s1254_s1 = inlined_call_operand.vmem [shape: f32[4], index: 1, kind: input, shape index: {}]   ;;  %s1255_s2 = inlined_call_operand.vmem [shape: f32[2,3,2,128], index: 2, kind: input, shape index: {}]   ;;  %s1256_s3 = inlined_call_operand.vmem [shape: f32[2,3,2,128], index: 3, kind: output, shape index: {}]  }
   0x1   :  { %9 = vsyncpa [#allocation5], 0  ;;  %s1005_s12 = smov 0  }
   0x2 LB: > { %s1011_s13 = sadd.s32 4294967295, %s917_s12   ;;  %p545_p0 = scmp.ge.s32.totalorder %s917_s12, 1  ;;  %s917_s12 = sphi %s1005_s12, %s15_s12  }
   0x3   : > { %p114_p1 = scmp.lt.s32.totalorder %s917_s12, 3  ;;  %s127_s16 = sshll.u32 %s1253_s0, 4  ;;  %s128_s16 = int_to_ptr.vmem [resolvable:$true] %s127_s16 }
   0x4   : > { %p1257_p3 = scmp.eq.s32.totalorder %s1011_s13, 0  ;;  %s138_s20 = sshll.u32 %s1254_s1, 4  ;;  %s139_s20 = int_to_ptr.vmem [resolvable:$true] %s138_s20 }
   0x5   : > { %p1018_p2 = pnand %p545_p0, %p114_p1  ;;  %s809_s22 = scalar_lea.vmem %s128_s16, 16 }
   0x6   : > { %p810_p6 = scmp.ne.s32.totalorder %s128_s16, %s809_s22  ;;  %p817_p10 = scmp.lt.s32.totalorder %s128_s16, %s128_s16 }
   0x7   : > { %s1259_s17 = scalar_select %p1018_p2, 1, 0 }
   0x8   : > { %p650_p4 = pneg %p1018_p2  ;;  %p818_p11 = scmp.lt.s32.totalorder %s809_s22, %s809_s22 }
   0xa   : > { %p1030_p5 = pnand %p1257_p3, %p650_p4  ;;  %p819_p12 = por %p818_p11, %p817_p10 }
   0xc   : > { %p811_p7 = pneg %p1030_p5 }
   0xe   : > { %p812_p8 = pnand %p811_p7, %p810_p6 }
  0x10   : > { %p813_p9 = pneg %p812_p8 }
  0x12   : > { %p820_p13 = pnand %p819_p12, %p813_p9 }
  0x14   : > { %823 = shalt.err (!%p820_p13)
}
  0x15   : > { %s983_s23 = smov [#allocation2]   ;;  %s824_s24 = scalar_lea.vmem %s139_s20, 16 }
  0x16   : > { %653 = dma.vmem_to_smem (!%p1030_p5), %s128_s16, 16, %s983_s23, [#allocation3]  }
  0x17   : > { %p825_p0 = scmp.ne.s32.totalorder %s139_s20, %s824_s24  ;;  %p832_p3 = scmp.lt.s32.totalorder %s139_s20, %s139_s20 }
  0x18   : > { %p833_p2 = scmp.lt.s32.totalorder %s824_s24, %s824_s24 }
  0x19   : > { %p827_p1 = pnand %p825_p0, %p811_p7 }
  0x1a   : > { %p834_p6 = por %p833_p2, %p832_p3 }
  0x1b   : > { %p828_p4 = pneg %p827_p1 }
  0x1d   : > { %p835_p8 = pnand %p834_p6, %p828_p4 }
  0x1f   : > { %838 = shalt.err (!%p835_p8)
}
  0x20   : > { %s984_s25 = smov [#allocation4]   ;;  %p1261_p9 = scmp.ne.s32.totalorder %s1259_s17, 0 }
  0x21   : > { %656 = dma.vmem_to_smem (!%p1030_p5), %s139_s20, 16, %s984_s25, [#allocation5]  }
  0x22   : > { %159 = sbr.rel (%p1261_p9) target bundleno = 350 (0x15e), region = 32  ;;  %p1262_p10 = scmp.eq.s32.totalorder (!%p1261_p9), %s1011_s13, 0 }
  0x27   : > { %908 = dma.done.wait (%p1262_p10), [#allocation3], 16   ;;  %p1263_p11 = pmov %p1262_p10 }
  0x28   : > { %p1264_p7 = pmov %p1262_p10 }
  0x29   : > { %910 = vsyncadd (%p1263_p11), [#allocation3], 4294967280 }
  0x2a   : > { %912 = dma.done.wait (%p1264_p7), [#allocation5], 16   ;;  %p1265_p2 = pmov %p1264_p7 }
  0x2c   : > { %914 = vsyncadd (%p1265_p2), [#allocation5], 4294967280 }
  0x2d   : > { %169 = sfence }
  0x2e   : > { %p188_p3 = scmp.lt.s32.totalorder %s1011_s13, 1  ;;  %s1051_s26 = sld [smem:[#allocation4]]  ;;  %v1079_v3 = vmov 0   ;;  %v1081_v4 = vmov 0   ;;  %v1083_v5 = vmov 0  }
  0x2f   : > { %s1053_s27 = sld [smem:[#allocation4 + $0x1]] }
  0x30   : > { %s1281_s13 = smov (!%p188_p3, %s1011_s13), 1  ;;  %s1056_s28 = sld [smem:[#allocation4 + $0x2]] }
  0x31   : > { %s571_s29 = smul.u32 6, %s1281_s13  ;;  %s1058_s30 = sld [smem:[#allocation4 + $0x3]] }
  0x32   : > { %s1060_s4 = sld [smem:[#allocation2 + $0x4]] }
  0x33   : > { %s192_s7 = scalar_lea.vmem %s1255_s2, %s571_s29  ;;  %s1068_s10 = scalar_lea.vmem %s1256_s3, %s571_s29 }
  0x34   : > { %s1070_s11 = sld [smem:[#allocation2 + $0x5]]  ;;  %v1072_v0 = vld [vmem:[%s192_s7] sm:$0x3]   ;;  %v1074_v1 = vld [vmem:[%s192_s7 + $0x2] sm:$0x3]  }
  0x35   : > { %v1076_v2 = vld [vmem:[%s192_s7 + $0x4] sm:$0x3]  }
  0x38   : > { %p559_p5 = scmp.le.s32.totalorder %s1060_s4, 0 }
  0x39   : > { %s1096_s13 = smov (!%p559_p5), 0  }
  0x3a   : > { %210 = sbr.rel (%p559_p5) target bundleno = 335 (0x14f), region = 44 }
  0x3f   : > { %v1266_v6 = vmov %v1076_v2  ;;  %v1267_v7 = vmov %v1074_v1  ;;  %v1268_v8 = vmov %v1072_v0 }
  0x40 LB: >> { %v225_v9 = vstv %s1051_s26  ;;  %s1112_s14 = sld [smem:[#allocation2 + %s933_s13]]  ;;  %s933_s13 = sphi %s1096_s13, %s216_s13   ;;  %v929_v8 = vphi %v1268_v8, %v1276_v8   ;;  %v925_v7 = vphi %v1267_v7, %v1275_v7   ;;  %v921_v6 = vphi %v1266_v6, %v1274_v6  }
  0x41   : >> { %v226_v10 = vmul.f32 %v929_v8, %v225_v9  ;;  %v229_v11 = vmul.f32 %v925_v7, %v225_v9  ;;  %v232_v12 = vmul.f32 %v921_v6, %v225_v9 }
  0x43   : >> { %v227_v13 = vmax.f32 %v226_v10, 0.0  ;;  %v230_v14 = vmax.f32 %v229_v11, 0.0  ;;  %v233_v15 = vmax.f32 %v232_v12, 0.0 }
  0x45   : >> { %v228_v16 = vmin.f32 %v227_v13, 1.0  ;;  %v231_v17 = vmin.f32 %v230_v14, 1.0  ;;  %v234_v18 = vmin.f32 %v233_v15, 1.0 }
  0x46   : >> { %p221_p12 = scmp.eq.s32.totalorder %s1112_s14, 0 }
  0x47   : >> { %p241_p13 = scmp.eq.s32.totalorder (!%p221_p12), %s1112_s14, 1  ;;  %p561_p0 = scmp.ne.s32.totalorder (!%p221_p12), %s1112_s14, 1 }
  0x48   : >> { %s581_s15 = scalar_select %p221_p12, 1, 0 }
  0x49   : >> { %240 = sbr.rel (%p221_p12) target bundleno = 327 (0x147), region = 59 }
  0x4a   : >> { %v582_v19 = vstv %s581_s15 }
  0x4b   : >> { %vm583_vm0 = vcmp.ne.s32.totalorder %v582_v19, 0 }
  0x4c   : >> { %v584_v20 = vsel %vm583_vm0, %v228_v16, 0   ;;  %v588_v21 = vsel %vm583_vm0, %v231_v17, 0   ;;  %v592_v22 = vsel %vm583_vm0, %v234_v18, 0  }
  0x4e   : >> { %v935_v23 = vmov 0   ;;  %v939_v24 = vmov 0   ;;  %v943_v25 = vmov 0   ;;  %244 = sbr.rel (%p561_p0) target bundleno = 254 (0xfe), region = 63  ;;  %s281_s16 = ssub.f32 (!%p561_p0), 1.0, %s1053_s27 }
  0x53   : >> { %vm245_vm1 = vcmask 1041408   ;;  %v279_v54 = vstv %s1053_s27  ;;  %v282_v56 = vstv %s281_s16 }
  0x54   : >> { %v267_v26 = vsel %vm245_vm1, %v921_v6, 0.0  ;;  %v246_v27 = vsel %vm245_vm1, %v929_v8, 0.0  ;;  %v256_v28 = vsel %vm245_vm1, %v925_v7, 0.0  ;;  %v280_v57 = vmul.f32 %v929_v8, %v279_v54 }
  0x55   : >> { %268 = vadd.xlane.f32.xlu1 %v267_v26  ;;  %247 = vadd.xlane.f32.xlu0 %v246_v27  ;;  %v287_v58 = vmul.f32 %v925_v7, %v279_v54  ;;  %v291_v59 = vmul.f32 %v921_v6, %v279_v54 }
  0x59   : >> { %257 = vadd.xlane.f32.xlu0 %v256_v28 }
  0xde   : >> { %v269_v29 = vpop.xlane.xlu1 %268  ;;  %v248_v30 = vpop.xlane.xlu0 %247 }
  0xdf   : >> { %v270_v31 = vrot.slane %v269_v29, 4  ;;  %v249_v32 = vrot.slane %v248_v30, 4 }
  0xe1   : >> { %v271_v33 = vadd.f32 %v270_v31, %v269_v29  ;;  %v250_v34 = vadd.f32 %v249_v32, %v248_v30 }
  0xe2   : >> { %v258_v35 = vpop.xlane.xlu0 %257 }
  0xe3   : >> { %v272_v36 = vrot.slane %v271_v33, 2  ;;  %v251_v37 = vrot.slane %v250_v34, 2  ;;  %v259_v38 = vrot.slane %v258_v35, 4 }
  0xe5   : >> { %v273_v39 = vadd.f32 %v272_v36, %v271_v33  ;;  %v252_v40 = vadd.f32 %v251_v37, %v250_v34  ;;  %v260_v41 = vadd.f32 %v259_v38, %v258_v35 }
  0xe7   : >> { %v253_v42 = vrot.slane %v252_v40, 1  ;;  %v261_v43 = vrot.slane %v260_v41, 2  ;;  %v274_v44 = vrot.slane %v273_v39, 1 }
  0xe9   : >> { %v262_v45 = vadd.f32 %v261_v43, %v260_v41  ;;  %v254_v46 = vadd.f32 %v253_v42, %v252_v40  ;;  %v275_v48 = vadd.f32 %v274_v44, %v273_v39 }
  0xeb   : >> { %v263_v47 = vrot.slane %v262_v45, 1  ;;  %v255_v50 = vmul.f32 0.2989, %v254_v46  ;;  %v276_v52 = vmul.f32 0.114, %v275_v48 }
  0xed   : >> { %v264_v49 = vadd.f32 %v263_v47, %v262_v45 }
  0xef   : >> { %v265_v51 = vmul.f32 0.587, %v264_v49 }
  0xf1   : >> { %v266_v53 = vadd.f32 %v265_v51, %v255_v50 }
  0xf3   : >> { %v277_v55 = vadd.f32 %v276_v52, %v266_v53 }
  0xf5   : >> { %v278_v60 = vmul.f32 0.00390625, %v277_v55 }
  0xf7   : >> { %v283_v61 = vmul.f32 %v282_v56, %v278_v60 }
  0xf9   : >> { %v284_v62 = vadd.f32 %v283_v61, %v280_v57  ;;  %v288_v63 = vadd.f32 %v287_v58, %v283_v61  ;;  %v292_v3 = vadd.f32 %v291_v59, %v283_v61 }
  0xfb   : >> { %v285_v4 = vmax.f32 %v284_v62, 0.0  ;;  %v289_v5 = vmax.f32 %v288_v63, 0.0  ;;  %v293_v9 = vmax.f32 %v292_v3, 0.0 }
  0xfd   : >> { %v286_v25 = vmin.f32 %v285_v4, 1.0   ;;  %v290_v24 = vmin.f32 %v289_v5, 1.0   ;;  %v294_v23 = vmin.f32 %v293_v9, 1.0  }
  0xfe PF: >> { %300 = sbr.rel (%p241_p13) target bundleno = 326 (0x146), region = 67  ;;  %s366_s17 = sadd.f32 (!%p241_p13), 1.0, %s1058_s30  ;;  %v945_v25 = vphi %v943_v25, %v286_v25   ;;  %v941_v24 = vphi %v939_v24, %v290_v24   ;;  %v937_v23 = vphi %v935_v23, %v294_v23  }
  0xff   : >> { %s312_s18 = ssub.f32 (!%p241_p13), 1.0, %s1056_s28  ;;  %p301_p1 = scmp.eq.s32.totalorder (!%p241_p13), %s1112_s14, 2 }
 0x100   : >> { %p562_p4 = scmp.ne.s32.totalorder (!%p241_p13), %s1112_s14, 2 }
 0x103   : >> { %v332_v10 = vmax.f32 %v929_v8, %v925_v7  ;;  %v334_v12 = vmin.f32 %v929_v8, %v925_v7  ;;  %v367_v34 = vstv %s366_s17  ;;  %v305_v36 = vmul.f32 0.2989, %v929_v8  ;;  %s594_s19 = scalar_select %p301_p1, 1, 0 }
 0x104   : >> { %v306_v37 = vmul.f32 0.587, %v925_v7  ;;  %v308_v41 = vmul.f32 0.114, %v921_v6  ;;  %v310_v46 = vstv %s1056_s28  ;;  %v313_v47 = vstv %s312_s18  ;;  %s607_s20 = scalar_select %p562_p4, 1, 0 }
 0x105   : >> { %v1145_v11 = vmax.f32 %v332_v10, %v921_v6  ;;  %v335_v13 = vmin.f32 %v334_v12, %v921_v6  ;;  %v311_v52 = vmul.f32 %v929_v8, %v310_v46  ;;  %v318_v54 = vmul.f32 %v925_v7, %v310_v46 }
 0x106   : >> { %v307_v40 = vadd.f32 %v306_v37, %v305_v36  ;;  %v322_v58 = vmul.f32 %v921_v6, %v310_v46 }
 0x107   : >> { %vm336_vm2 = vcmp.eq.f32.partialorder %v1145_v11, %v335_v13  ;;  %v1152_v14 = vsub.f32 %v1145_v11, %v335_v13  ;;  %v343_v16 = vsub.f32 %v1145_v11, %v929_v8  ;;  %v345_v17 = vsub.f32 %v1145_v11, %v925_v7 }
 0x108   : >> { %v347_v18 = vsub.f32 %v1145_v11, %v921_v6  ;;  %vm352_vm3 = vcmp.eq.f32.partialorder %v1145_v11, %v925_v7  ;;  %vm353_vm4 = vcmp.ne.f32.partialorder %v1145_v11, %v929_v8  ;;  %vm358_vm5 = vcmp.ne.f32.partialorder %v1145_v11, %v925_v7 }
 0x109   : >> { %v341_v15 = vsel %vm336_vm2, 1.0, %v1152_v14  ;;  %vm349_vm6 = vcmp.eq.f32.partialorder %v1145_v11, %v929_v8  ;;  %vm354_vm7 = vmand %vm352_vm3, %vm353_vm4  ;;  %v338_v32 = vsel %vm336_vm2, 1.0, %v1145_v11  ;;  %v309_v44 = vadd.f32 %v308_v41, %v307_v40 }
 0x10a   : >> { %805 = vrcp.f32 %v341_v15  ;;  %vm359_vm8 = vmand %vm358_vm5, %vm353_vm4 }
 0x10b   : >> { %807 = vrcp.f32 %v338_v32  ;;  %v314_v53 = vmul.f32 %v313_v47, %v309_v44 }
 0x10d   : >> { %v315_v7 = vadd.f32 %v314_v53, %v311_v52  ;;  %v319_v4 = vadd.f32 %v318_v54, %v314_v53  ;;  %v323_v9 = vadd.f32 %v322_v58, %v314_v53 }
 0x117   : >> { %v806_v19 = vpop.eup %805 }
 0x118   : >> { %v344_v20 = vmul.f32 %v806_v19, %v343_v16  ;;  %v346_v21 = vmul.f32 %v806_v19, %v345_v17  ;;  %v348_v22 = vmul.f32 %v806_v19, %v347_v18  ;;  %v808_v55 = vpop.eup %807  ;;  %v316_v17 = vmax.f32 %v315_v7, 0.0 }
 0x119   : >> { %v340_v62 = vmul.f32 %v808_v55, %v1152_v14  ;;  %v320_v14 = vmax.f32 %v319_v4, 0.0  ;;  %v324_v19 = vmax.f32 %v323_v9, 0.0 }
 0x11a   : >> { %v350_v23 = vsub.f32 %v348_v22, %v346_v21  ;;  %v355_v24 = vadd.f32 2.0, %v344_v20  ;;  %v360_v25 = vadd.f32 4.0, %v346_v21 }
 0x11b   : >> { %v384_v15 = vmul.f32 %v340_v62, %v1145_v11 }
 0x11c   : >> { %v351_v26 = vsel %vm349_vm6, %v350_v23, 0.0  ;;  %v356_v27 = vsub.f32 %v355_v24, %v348_v22  ;;  %v361_v28 = vsub.f32 %v360_v25, %v344_v20  ;;  %v595_v20 = vstv %s594_s19 }
 0x11d   : >> { %vm1191_vm14 = vcmp.ne.s32.totalorder %v595_v20, 0 }
 0x11e   : >> { %v357_v29 = vsel %vm354_vm7, %v356_v27, 0.0  ;;  %v362_v30 = vsel %vm359_vm8, %v361_v28, 0.0  ;;  %v321_v27 = vmin.f32 %v320_v14, 1.0 }
 0x11f   : >> { %v363_v31 = vadd.f32 %v357_v29, %v351_v26  ;;  %v317_v26 = vmin.f32 %v316_v17, 1.0 }
 0x121   : >> { %v364_v33 = vadd.f32 %v363_v31, %v362_v30  ;;  %v325_v30 = vmin.f32 %v324_v19, 1.0  ;;  %v597_v37 = vsel %vm1191_vm14, %v317_v26, 0 }
 0x123   : >> { %v365_v35 = vmul.f32 0.16666667, %v364_v33  ;;  %v608_v33 = vstv %s607_s20  ;;  %v605_v40 = vsel %vm1191_vm14, %v325_v30, 0 }
 0x124   : >> { %vm609_vm15 = vcmp.ne.s32.totalorder %v608_v33, 0 }
 0x125   : >> { %v368_v38 = vadd.f32 %v367_v34, %v365_v35 }
 0x127   : >> { %vm369_vm9 = vcmp.ge.f32.partialorder %v368_v38, 1.0  ;;  %v563_v39 = vadd.f32 -1.0, %v368_v38 }
 0x129   : >> { %v371_v42 = vsel %vm369_vm9, %v563_v39, %v368_v38  ;;  %v601_v38 = vsel %vm1191_vm14, %v321_v27, 0 }
 0x12a   : >> { %vm372_vm10 = vcmp.ge.f32.partialorder %v371_v42, 1.0  ;;  %v564_v43 = vadd.f32 -1.0, %v371_v42 }
 0x12c   : >> { %v374_v45 = vsel %vm372_vm10, %v564_v43, %v371_v42 }
 0x12d   : >> { %v375_v48 = vmul.f32 6.0, %v374_v45 }
 0x12f   : >> { %v376_v49 = vadd.f32 5.0, %v375_v48  ;;  %v389_v50 = vadd.f32 3.0, %v375_v48  ;;  %v401_v51 = vadd.f32 1.0, %v375_v48 }
 0x131   : >> { %vm377_vm11 = vcmp.ge.f32.partialorder %v376_v49, 6.0  ;;  %v565_v56 = vadd.f32 -6.0, %v376_v49  ;;  %vm390_vm12 = vcmp.ge.f32.partialorder %v389_v50, 6.0  ;;  %v566_v57 = vadd.f32 -6.0, %v389_v50 }
 0x132   : >> { %vm402_vm13 = vcmp.ge.f32.partialorder %v401_v51, 6.0  ;;  %v567_v59 = vadd.f32 -6.0, %v401_v51 }
 0x133   : >> { %v379_v60 = vsel %vm377_vm11, %v565_v56, %v376_v49  ;;  %v392_v61 = vsel %vm390_vm12, %v566_v57, %v389_v50 }
 0x134   : >> { %v380_v8 = vsub.f32 4.0, %v379_v60  ;;  %v393_v63 = vsub.f32 4.0, %v392_v61  ;;  %v404_v3 = vsel %vm402_vm13, %v567_v59, %v401_v51 }
 0x135   : >> { %v405_v5 = vsub.f32 4.0, %v404_v3 }
 0x136   : >> { %v381_v10 = vmin.f32 %v379_v60, %v380_v8  ;;  %v394_v12 = vmin.f32 %v392_v61, %v393_v63 }
 0x137   : >> { %v406_v6 = vmin.f32 %v404_v3, %v405_v5 }
 0x138   : >> { %v382_v13 = vmax.f32 %v381_v10, 0.0  ;;  %v395_v16 = vmax.f32 %v394_v12, 0.0 }
 0x139   : >> { %v407_v18 = vmax.f32 %v406_v6, 0.0 }
 0x13a   : >> { %v383_v21 = vmin.f32 %v382_v13, 1.0  ;;  %v396_v22 = vmin.f32 %v395_v16, 1.0 }
 0x13b   : >> { %v408_v23 = vmin.f32 %v407_v18, 1.0 }
 0x13c   : >> { %v385_v24 = vmul.f32 %v384_v15, %v383_v21  ;;  %v397_v25 = vmul.f32 %v396_v22, %v384_v15 }
 0x13d   : >> { %v409_v29 = vmul.f32 %v408_v23, %v384_v15 }
 0x13e   : >> { %v386_v31 = vsub.f32 %v1145_v11, %v385_v24  ;;  %v398_v32 = vsub.f32 %v1145_v11, %v397_v25 }
 0x13f   : >> { %v410_v34 = vsub.f32 %v1145_v11, %v409_v29 }
 0x140   : >> { %v387_v35 = vmax.f32 %v386_v31, 0.0  ;;  %v399_v36 = vmax.f32 %v398_v32, 0.0 }
 0x141   : >> { %v411_v39 = vmax.f32 %v410_v34, 0.0 }
 0x142   : >> { %v388_v41 = vmin.f32 %v387_v35, 1.0  ;;  %v400_v42 = vmin.f32 %v399_v36, 1.0 }
 0x143   : >> { %v412_v43 = vmin.f32 %v411_v39, 1.0 }
 0x144   : >> { %v610_v25 = vsel %vm609_vm15, %v388_v41, %v597_v37   ;;  %v614_v24 = vsel %vm609_vm15, %v400_v42, %v601_v38  }
 0x145   : >> { %v618_v23 = vsel %vm609_vm15, %v412_v43, %v605_v40  }
 0x146 PF: >> { %v1271_v22 = vmov %v949_v23  ;;  %v1272_v21 = vmov %v953_v24  ;;  %v1273_v20 = vmov %v957_v25  ;;  %v957_v25 = vphi %v945_v25, %v610_v25   ;;  %v953_v24 = vphi %v941_v24, %v614_v24   ;;  %v949_v23 = vphi %v937_v23, %v618_v23  }
 0x147 PF: >> { %s216_s13 = sadd.s32 1, %s933_s13   ;;  %v1274_v6 = vmov %v961_v22  ;;  %v1275_v7 = vmov %v965_v21  ;;  %v1276_v8 = vmov %v969_v20  ;;  %v969_v20 = vphi %v584_v20, %v1273_v20   ;;  %v965_v21 = vphi %v588_v21, %v1272_v21   ;;  %v961_v22 = vphi %v592_v22, %v1271_v22  }
 0x148   : >> { %p213_p6 = scmp.ge.s32.totalorder %s216_s13, 4  }
 0x149   : > { %v1277_v3 = vmov (%p213_p6), %v961_v22  ;;  %v1278_v4 = vmov (%p213_p6), %v965_v21  ;;  %v1279_v5 = vmov (%p213_p6), %v969_v20 }
 0x14a   : > { %215 = sbr.rel (!%p213_p6) target bundleno = 64 (0x40), region = 118 }
 0x14f PF: > { %s620_s21 = scalar_select %p559_p5, 1, 0  ;;  %v981_v5 = vphi %v1083_v5, %v1279_v5   ;;  %v977_v4 = vphi %v1081_v4, %v1278_v4   ;;  %v973_v3 = vphi %v1079_v3, %v1277_v3  }
 0x150   : > { %p431_p8 = scmp.gt.s32.totalorder %s1070_s11, 0  ;;  %p568_p9 = scmp.le.s32.totalorder %s1070_s11, 0 }
 0x151   : > { %v621_v11 = vstv %s620_s21 }
 0x152   : > { %vm622_vm0 = vcmp.ne.s32.totalorder %v621_v11, 0  ;;  %s633_s22 = scalar_select %p431_p8, 1, 0 }
 0x153   : > { %v623_v44 = vsel %vm622_vm0, %v1072_v0, %v981_v5  ;;  %v627_v45 = vsel %vm622_vm0, %v1074_v1, %v977_v4  ;;  %v631_v46 = vsel %vm622_vm0, %v1076_v2, %v973_v3  ;;  %s638_s23 = scalar_select %p568_p9, 1, 0 }
 0x154   : > { %v435_v47 = vmul.f32 0.2989, %v623_v44  ;;  %v436_v48 = vmul.f32 0.587, %v627_v45  ;;  %v438_v49 = vmul.f32 0.114, %v631_v46  ;;  %v634_v50 = vstv %s633_s22 }
 0x155   : > { %v639_v51 = vstv %s638_s23  ;;  %vm635_vm1 = vcmp.ne.s32.totalorder %v634_v50, 0 }
 0x156   : > { %v437_v52 = vadd.f32 %v436_v48, %v435_v47  ;;  %vm640_vm2 = vcmp.ne.s32.totalorder %v639_v51, 0 }
 0x158   : > { %v439_v53 = vadd.f32 %v438_v49, %v437_v52 }
 0x15a   : > { %v636_v54 = vsel %vm635_vm1, %v439_v53, 0 }
 0x15b   : > { %v641_v55 = vsel %vm640_vm2, %v623_v44, %v636_v54  ;;  %v645_v0 = vsel %vm640_vm2, %v627_v45, %v636_v54  ;;  %v649_v56 = vsel %vm640_vm2, %v631_v46, %v636_v54 }
 0x15c   : > { %449 = vst [vmem:[%s1068_s10] sm:$0x3] %v641_v55  ;;  %450 = vst [vmem:[%s1068_s10 + $0x2] sm:$0x3] %v645_v0 }
 0x15d   : > { %451 = vst [vmem:[%s1068_s10 + $0x4] sm:$0x3] %v649_v56 }
 0x15e PF: > { %s15_s12 = sadd.s32 1, %s917_s12  }
 0x15f   : > { %p12_p10 = scmp.ge.s32.totalorder %s15_s12, 4  }
 0x161   :  { %14 = sbr.rel (!%p12_p10) target bundleno = 2 (0x2), region = 129 }
 0x166   :  { %473 = vsyncpa [#allocation3], 1 }
 0x167   :  { %475 = vsyncpa [#allocation3 + $0x1], 1 }
 0x168   :  { %476 = vsyncpa [#allocation5], 1 }

</bundles_post_ra>
